<compile_context>
chip_gen: v5e
topology: v5e:2x2
jax: 0.10.0
libtpu: 0.0.40
codegen_flags: <defaults>
</compile_context>

<pallas_src>
import jax
import jax.numpy as jnp
import numpy as np
from jax import lax
from jax.experimental import pallas as pl
from jax.experimental.pallas import tpu as pltpu


# --------------------------------------------------------------------------------------
# Kernels
# --------------------------------------------------------------------------------------
def distmult_forward_kernel(lhs_ref, rel_ref, out_ref):
    # forward(lhs, rel) = lhs * rel  (pure VPU elementwise, lane-dense output)
    out_ref[...] = (lhs_ref[...] * rel_ref[...]).astype(out_ref.dtype)


def distmult_score_kernel(lhs_ref, rel_ref, ent_t_ref, out_ref):
    # Fused: pred = lhs * rel (f32 VPU), scores = pred @ ent_tile (MXU, f32 accumulate).
    # ent_t_ref is a (D, te) tile of the pre-transposed entity table (standard K,N form).
    pred = lhs_ref[...].astype(jnp.float32) * rel_ref[...].astype(jnp.float32)
    scores = lax.dot_general(
        pred.astype(ent_t_ref.dtype), ent_t_ref[...],
        dimension_numbers=(((1,), (0,)), ((), ())),     # (tb, D) @ (D, te)
        preferred_element_type=jnp.float32)
    out_ref[...] = scores.astype(out_ref.dtype)


# --------------------------------------------------------------------------------------
# Wrappers
# --------------------------------------------------------------------------------------
def distmult_forward(lhs, rel, *, tb=None, force_pallas=False):
    """forward(lhs, rel) = lhs * rel, shapes (B, D)."""
    B, D = lhs.shape
    assert rel.shape == (B, D)

    # A standalone pallas_call has fixed per-invocation overhead that dwarfs a tiny
    # elementwise multiply; let XLA fuse it unless explicitly forced (or the data is big).
    if not force_pallas and lhs.size * lhs.dtype.itemsize < (1 << 20):
        return lhs * rel

    if tb is None:
        tb = B if B <= 1024 else 1024
    assert B % tb == 0 and (tb % 8 == 0 or tb == B)
    row = lambda i: (i, 0)
    return pl.pallas_call(
        distmult_forward_kernel,
        out_shape=jax.ShapeDtypeStruct((B, D), lhs.dtype),
        grid_spec=pltpu.PrefetchScalarGridSpec(
            num_scalar_prefetch=0,
            grid=(B // tb,),
            in_specs=[pl.BlockSpec((tb, D), row),
                      pl.BlockSpec((tb, D), row)],
            out_specs=pl.BlockSpec((tb, D), row),
        ),
        compiler_params=pltpu.CompilerParams(dimension_semantics=("parallel",)),
    )(lhs, rel)


def distmult_scores(lhs, rel, ent_table, *, tb=None, te=None,
                    out_dtype=None, ent_compute_dtype=jnp.bfloat16,
                    vmem_limit_bytes=None):
    """get_preds(forward(lhs, rel), tgt_ent_idx=None): (lhs * rel) @ ent_table.T -> (B, E)."""
    B, D = lhs.shape
    E, D2 = ent_table.shape
    assert D == D2 and rel.shape == (B, D)
    out_dtype = lhs.dtype if out_dtype is None else out_dtype

    # One-time (amortized) cast + transpose to (D, E): bf16 halves the dominant HBM stream
    # and puts the MXU RHS in standard weight-stationary (K, N) form (lane-dense output N).
    ent_t = jnp.asarray(ent_table, dtype=ent_compute_dtype).T            # (D, E)

    # Batch tile: whole batch per block when small; otherwise MXU-friendly 256-row tiles.
    if tb is None:
        tb = B if (B <= 256 or B % 256 != 0) else 256
    assert B % tb == 0 and (tb % 8 == 0 or tb == B)

    # Entity tile: lane-dense (multiple of 128), capped at 2048, and small enough that the
    # entity axis has >= 4 blocks so each v7x TensorCore gets several pipelined grid steps
    # (BlockSpec double-buffering can then hide the entity-tile DMAs). These sizes also fit
    # v5e's 16 MiB scoped-VMEM default; re-derive caps if you grow tiles for v6e (128 MiB)
    # vs v7x (64 MiB) and set vmem_limit_bytes accordingly.
    if te is None:
        cands = [c for c in (2048, 1024, 512, 256, 128) if E % c == 0]
        pref = [c for c in cands if E // c >= 4]
        te = pref[0] if pref else (cands[0] if cands else E)
    assert E % te == 0

    # Grid: entities OUTER (slow axis), batch INNER (fast axis). The entity-tile block
    # index is constant across the inner axis, so each entity tile is streamed from HBM
    # exactly once (instead of once per batch tile); lhs/rel re-reads are tiny (B*D).
    grid = (E // te, B // tb)

    cp_kwargs = dict(dimension_semantics=("parallel", "parallel"))
    if vmem_limit_bytes is not None:
        cp_kwargs["vmem_limit_bytes"] = vmem_limit_bytes

    return pl.pallas_call(
        distmult_score_kernel,
        out_shape=jax.ShapeDtypeStruct((B, E), out_dtype),
        grid_spec=pltpu.PrefetchScalarGridSpec(
            num_scalar_prefetch=0,
            grid=grid,
            in_specs=[
                pl.BlockSpec((tb, D), lambda j, i: (i, 0)),   # lhs rows
                pl.BlockSpec((tb, D), lambda j, i: (i, 0)),   # rel rows
                pl.BlockSpec((D, te), lambda j, i: (0, j)),   # entity-table (K, N) tile
            ],
            out_specs=pl.BlockSpec((tb, te), lambda j, i: (i, j)),
        ),
        compiler_params=pltpu.CompilerParams(**cp_kwargs),
    )(lhs, rel, ent_t)

# TODO(synk): the tgt_ent_idx != None path of get_preds (per-row bmm over gathered
#             candidate embeddings) is not implemented; only full-vocabulary scoring.
# TODO(synk): embedding gathers could be fused into the score kernel via
#             PrefetchScalarGridSpec(num_scalar_prefetch=2) + pl.Element(1) row gathers;
#             kept as plain-JAX gathers here (small B).


# --------------------------------------------------------------------------------------
# Demo / correctness check
# --------------------------------------------------------------------------------------
if __name__ == "__main__":
    # Small shapes consistent with the module (dim_ent_embedding == dim_rel_embedding).
    NUM_ENTS, NUM_RELS = 512, 32
    DIM = 128
    B = 16
    INIT_SIZE = 0.001          # KGE.init_size scaling of embedding tables

    key = jax.random.PRNGKey(0)
    k_ent, k_rel, k_lhs, k_r = jax.random.split(key, 4)

    ent_table = jax.random.normal(k_ent, (NUM_ENTS, DIM), jnp.float32) * INIT_SIZE
    rel_table = jax.random.normal(k_rel, (NUM_RELS, DIM), jnp.float32) * INIT_SIZE

    lhs_idx = jax.random.randint(k_lhs, (B,), 0, NUM_ENTS, jnp.int32)
    rel_idx = jax.random.randint(k_r, (B,), 0, NUM_RELS, jnp.int32)

    # nn.Embedding lookups -> plain-JAX gathers (glue around the kernels).
    lhs = ent_table[lhs_idx]
    rel = rel_table[rel_idx]

    # --- forward(lhs, rel) = lhs * rel ---
    pred = jax.block_until_ready(distmult_forward(lhs, rel, force_pallas=True))
    ref_pred = np.asarray(lhs) * np.asarray(rel)
    np.testing.assert_allclose(np.asarray(pred), ref_pred, rtol=1e-6, atol=1e-12)
    # Size-gated fallback path (plain jnp) must agree exactly for tiny inputs.
    pred_gated = jax.block_until_ready(distmult_forward(lhs, rel))
    np.testing.assert_allclose(np.asarray(pred_gated), ref_pred, rtol=1e-6, atol=1e-12)

    # --- get_preds(pred, tgt_ent_idx=None) = pred @ ent_table.T (fused in the kernel) ---
    scores = jax.block_until_ready(distmult_scores(lhs, rel, ent_table))
    ref_scores = ref_pred.astype(np.float64) @ np.asarray(ent_table).T.astype(np.float64)
    # bf16 entity table / bf16 matmul operands: tolerance scaled to the score magnitude.
    np.testing.assert_allclose(
        np.asarray(scores, dtype=np.float64), ref_scores,
        rtol=2e-2, atol=5e-3 * float(np.abs(ref_scores).max()))

    assert pred.shape == (B, DIM) and scores.shape == (B, NUM_ENTS)
    print("KERNEL_OK")
</pallas_src>

<mosaic_0001>
module attributes {stable_mosaic.version = 11 : i64} {
  func.func @distmult_forward_kernel(%arg0: i32, %arg1: memref<16x128xf32, #tpu.memory_space<vmem>>, %arg2: memref<16x128xf32, #tpu.memory_space<vmem>>, %arg3: memref<16x128xf32, #tpu.memory_space<vmem>>) attributes {dimension_semantics = [#tpu.dimension_semantics<parallel>], iteration_bounds = array<i64: 1>, scalar_prefetch = 0 : i64, scratch_operands = 0 : i64, tpu.core_type = #tpu.core_type<tc>, window_params = [{transform_indices = @transform_0, window_bounds = array<i64: 16, 128>}, {transform_indices = @transform_1, window_bounds = array<i64: 16, 128>}, {transform_indices = @transform_2, window_bounds = array<i64: 16, 128>}]} {
    %c0 = arith.constant 0 : index
    %c0_0 = arith.constant 0 : index
    %0 = vector.load %arg1[%c0, %c0_0] : memref<16x128xf32, #tpu.memory_space<vmem>>, vector<16x128xf32>
    %c0_1 = arith.constant 0 : index
    %c0_2 = arith.constant 0 : index
    %1 = vector.load %arg2[%c0_1, %c0_2] : memref<16x128xf32, #tpu.memory_space<vmem>>, vector<16x128xf32>
    %2 = arith.mulf %0, %1 : vector<16x128xf32>
    %c0_3 = arith.constant 0 : index
    %c0_4 = arith.constant 0 : index
    %3 = vector.load %arg3[%c0_3, %c0_4] : memref<16x128xf32, #tpu.memory_space<vmem>>, vector<16x128xf32>
    tpu.vector_store %arg3[%c0_3, %c0_4], %2 {strides = array<i32>} : memref<16x128xf32, #tpu.memory_space<vmem>>, vector<16x128xf32>,
    return
  }
  func.func @transform_0(%arg0: i32) -> (i32, i32) {
    %c0_i32 = arith.constant 0 : i32
    %c0_i32_0 = arith.constant 0 : i32
    return %arg0, %c0_i32 : i32, i32
  }
  func.func @transform_1(%arg0: i32) -> (i32, i32) {
    %c0_i32 = arith.constant 0 : i32
    %c0_i32_0 = arith.constant 0 : i32
    return %arg0, %c0_i32 : i32, i32
  }
  func.func @transform_2(%arg0: i32) -> (i32, i32) {
    %c0_i32 = arith.constant 0 : i32
    %c0_i32_0 = arith.constant 0 : i32
    return %arg0, %c0_i32 : i32, i32
  }
}

</mosaic_0001>

<bundles_post_ra>
// kernel: tpu_custom_call.1
= control target key start
LH: loop header
LB: loop body
LE: loop exit
PB: predicated region body
PF: predicated region fallthrough
CT: control target
= control target key end

     0   :  { %7 = vsyncpa [#allocation3], 0  ;;  %s184_s0 = inlined_call_operand.hbm [shape: f32[16,128], index: 0, kind: input, shape index: {}]   ;;  %s185_s1 = inlined_call_operand.hbm [shape: f32[16,128], index: 1, kind: input, shape index: {}]   ;;  %s186_s2 = inlined_call_operand.hbm [shape: f32[16,128], index: 2, kind: output, shape index: {}]  }
   0x1   :  { %8 = vsyncpa [#allocation6], 0 }
   0x2   :  { %9 = vsyncpa [#allocation4], 0  ;;  %s14_s11 = sshll.u32 %s184_s0, 4  ;;  %s155_s12 = smov [#allocation2]   ;;  %s15_s11 = int_to_ptr.hbm [resolvable:$true] %s14_s11 }
   0x3   :  { %s16_s13 = sshll.u32 %s155_s12, 4  ;;  %s27_s16 = sshll.u32 %s185_s1, 4  ;;  %s17_s13 = int_to_ptr.vmem [resolvable:$true] %s16_s13  ;;  %s28_s16 = int_to_ptr.hbm [resolvable:$true] %s27_s16 }
   0x4   :  { %s156_s17 = smov 128   ;;  %s157_s18 = smov 8  }
   0x5   :  { %22 = dma.hbm_to_vmem [thread:$0]  %s15_s11, 256, %s17_s13, [#allocation3], %s156_s17, %s156_s17, %s157_s18  }
   0x6   :  { %s158_s19 = smov [#allocation5]  }
   0x7   :  { %s29_s20 = sshll.u32 %s158_s19, 4  ;;  %s30_s20 = int_to_ptr.vmem [resolvable:$true] %s29_s20 }
   0x8   :  { %35 = dma.hbm_to_vmem [thread:$0]  %s28_s16, 256, %s30_s20, [#allocation6], %s156_s17, %s156_s17, %s157_s18  }
   0x9   :  { %149 = dma.done.wait [#allocation3], 256  }
   0xa   :  { %150 = vsyncadd [#allocation3], 4294967040 }
   0xb   :  { %151 = dma.done.wait [#allocation6], 256  }
   0xc   :  { %152 = vsyncadd [#allocation6], 4294967040  ;;  %s159_s0 = smov [#allocation7]   ;;  %s58_s24 = sshll.u32 %s186_s2, 4  ;;  %v44_v0 = vld [vmem:[#allocation2] sm:$0xff]  ;;  %v46_v1 = vld [vmem:[#allocation5] sm:$0xff]  ;;  %s59_s24 = int_to_ptr.hbm [resolvable:$true] %s58_s24 }
   0xd   :  { %s56_s21 = sshll.u32 %s159_s0, 4  ;;  %v45_v2 = vld [vmem:[#allocation2 + $0x8] sm:$0xff]  ;;  %v48_v3 = vmul.f32 %v46_v1, %v44_v0  ;;  %v47_v4 = vld [vmem:[#allocation5 + $0x8] sm:$0xff]  ;;  %s57_s21 = int_to_ptr.vmem [resolvable:$true] %s56_s21 }
   0xe   :  { %v49_v5 = vmul.f32 %v47_v4, %v45_v2 }
   0xf   :  { %50 = vst [vmem:[#allocation7] sm:$0xff] %v48_v3 }
  0x10   :  { %51 = vst [vmem:[#allocation7 + $0x8] sm:$0xff] %v49_v5 }
  0x11   :  { %64 = dma.vmem_to_hbm [thread:$0]  %s57_s21, 256, %s59_s24, [#allocation4], %s156_s17, %s156_s17, %s157_s18  }
  0x12   :  { %153 = dma.done.wait [#allocation4], 256  }
  0x13   :  { %154 = vsyncadd [#allocation4], 4294967040 }
  0x14   :  { %69 = vsyncpa [#allocation3], 1 }
  0x15   :  { %70 = vsyncpa [#allocation6], 1 }
  0x16   :  { %71 = vsyncpa [#allocation4], 1 }

</bundles_post_ra>
